<compile_context>
chip_gen: v7x
topology: tpu7x:2x2x1
jax: 0.10.0
libtpu: 0.0.40
codegen_flags: <defaults>
</compile_context>

<pallas_src>
import functools

import numpy as np
import jax
import jax.numpy as jnp
from jax import lax
from jax.experimental import pallas as pl
from jax.experimental.pallas import tpu as pltpu


# ---------------------------------------------------------------------------
# Path 1: HBM row-gather for large tables.
# ---------------------------------------------------------------------------
def _gather_kernel(idx_sm, table_hbm, out_ref, sem, *,
                   rows_per_block, group, embed_dim, window):
    """Gather `rows_per_block` embedding rows for grid step i.

    idx_sm    : SMEM (total_pad,) int32  flat row indices (offsets pre-added)
    table_hbm : HBM  (V, E)              embedding table (memory_space=pl.ANY)
    out_ref   : VMEM (rows_per_block//group, group*E) lane-packed output block
    sem       : DMA semaphores, `window` slots reused round-robin
    """
    i = pl.program_id(0)
    base = i * rows_per_block

    def make_copy(j):                              # j is a static Python int
        row = idx_sm[base + j]                     # scalar SMEM read
        return pltpu.make_async_copy(
            table_hbm.at[pl.ds(row, 1), :],        # (1, E) row in HBM
            out_ref.at[pl.ds(j // group, 1),       # lane-dense packed slot
                       pl.ds((j % group) * embed_dim, embed_dim)],
            sem.at[j % window],
        )

    copies = []
    for j in range(rows_per_block):                # static unroll
        if j >= window:
            copies[j - window].wait()              # free this semaphore slot
        cp = make_copy(j)
        cp.start()
        copies.append(cp)
    for j in range(max(0, rows_per_block - window), rows_per_block):
        copies[j].wait()                           # drain the tail


# ---------------------------------------------------------------------------
# Path 2: VMEM-resident fast path for small tables (one-hot matmul on MXU).
# ---------------------------------------------------------------------------
def _resident_onehot_kernel(idx_ref, table_ref, out_ref, *, vocab):
    idx = idx_ref[...]                                           # (R, 1) int32
    iota = lax.broadcasted_iota(jnp.int32, (idx.shape[0], vocab), 1)
    one_hot = (idx == iota).astype(table_ref.dtype)              # (R, V)
    out_ref[...] = jnp.dot(
        one_hot, table_ref[...],
        preferred_element_type=jnp.float32).astype(out_ref.dtype)


# ---------------------------------------------------------------------------
# Wrapper
# ---------------------------------------------------------------------------
def features_embedding_fwd(x, table, offsets, *,
                           rows_per_block=128,        # sweep 128-512
                           inflight_window=32,        # rolling DMA window
                           resident_vocab_limit=4096, # one-hot path cap
                           force_gather=False):
    """x: (B, F) int, table: (V, E) float, offsets: (F,) int -> (B, F, E)."""
    B, F = x.shape
    V, E = table.shape
    itemsize = jnp.dtype(table.dtype).itemsize
    total = B * F

    # Fold the module's `x + offsets` into the flat row index (removes all
    # per-row scalar modulo / offset math from the kernel issue loop).
    idx_flat = (x.astype(jnp.int32) + offsets.astype(jnp.int32)[None, :]
                ).reshape(total)

    # Lane-pack output rows when E < 128 so the output block is lane dense.
    group = (128 // E) if (E < 128 and 128 % E == 0) else 1

    rpb = max(int(rows_per_block), 8 * group)
    rpb = int(np.ceil(rpb / (8 * group)) * (8 * group))   # multiple of 8*group
    window = max(1, min(int(inflight_window), rpb))

    # Pad to a whole number of blocks; padding rows gather table row 0 (always
    # in range) and are sliced off below.
    total_pad = int(np.ceil(total / rpb) * rpb)
    if total_pad > total:
        idx_flat = jnp.concatenate(
            [idx_flat, jnp.zeros((total_pad - total,), jnp.int32)])
    num_blocks = total_pad // rpb

    # Conservative per-generation VMEM budget (fits v7x's smaller VMEM too).
    use_resident = ((not force_gather)
                    and V <= resident_vocab_limit
                    and V * E * itemsize <= 8 * 1024 * 1024)

    if use_resident:
        out_pad = pl.pallas_call(
            functools.partial(_resident_onehot_kernel, vocab=V),
            out_shape=jax.ShapeDtypeStruct((total_pad, E), table.dtype),
            grid_spec=pltpu.PrefetchScalarGridSpec(
                num_scalar_prefetch=0,
                grid=(num_blocks,),
                in_specs=[
                    pl.BlockSpec((rpb, 1), lambda i: (i, 0)),   # indices
                    pl.BlockSpec((V, E), lambda i: (0, 0)),     # resident table
                ],
                out_specs=pl.BlockSpec((rpb, E), lambda i: (i, 0)),
            ),
            compiler_params=pltpu.CompilerParams(
                dimension_semantics=("parallel",)),
        )(idx_flat.reshape(total_pad, 1), table)
        return out_pad[:total].reshape(B, F, E)

    # --- HBM gather path ---------------------------------------------------
    # Guard the SMEM scalar-prefetch footprint (1-D int32 pads to next pow2).
    if 4 * total_pad > (512 << 10):
        # TODO(synk): for very large batches, DMA per-block index chunks into
        # an SMEM scratch per grid step instead of one monolithic prefetch.
        raise ValueError("B*F too large for SMEM scalar prefetch of indices; "
                         "chunk the batch before calling.")

    kernel = functools.partial(
        _gather_kernel, rows_per_block=rpb, group=group,
        embed_dim=E, window=window)

    cost = pl.CostEstimate(
        flops=total,
        transcendentals=0,
        bytes_accessed=2 * total * E * itemsize + total_pad * 4,
    )

    out_packed = pl.pallas_call(
        kernel,
        out_shape=jax.ShapeDtypeStruct((total_pad // group, group * E),
                                       table.dtype),
        grid_spec=pltpu.PrefetchScalarGridSpec(
            num_scalar_prefetch=1,                       # flat indices -> SMEM
            grid=(num_blocks,),
            in_specs=[
                pl.BlockSpec(memory_space=pl.ANY),       # table stays in HBM
            ],
            out_specs=pl.BlockSpec((rpb // group, group * E),
                                   lambda i, idx_sm: (i, 0)),
            scratch_shapes=[pltpu.SemaphoreType.DMA((window,))],
        ),
        compiler_params=pltpu.CompilerParams(
            dimension_semantics=("parallel",)),          # no cross-step state
        cost_estimate=cost,
    )(idx_flat, table)

    return out_packed.reshape(total_pad, E)[:total].reshape(B, F, E)


if __name__ == "__main__":
    key = jax.random.PRNGKey(0)
    k_table, k_x = jax.random.split(key)

    # Small deterministic config consistent with the module.
    field_dims = [10, 6, 8, 4]          # 4 categorical fields
    embed_dim = 16
    B = 8
    F = len(field_dims)
    V = sum(field_dims)

    # offsets = (0, *cumsum(field_dims)[:-1])   (module constructor)
    offsets = jnp.asarray(
        np.array((0, *np.cumsum(field_dims)[:-1]), dtype=np.int32))

    # _init_weight_: nn.init.normal_(embedding.weight, std=0.01)
    table = (0.01 * jax.random.normal(k_table, (V, embed_dim))).astype(jnp.float32)

    # Per-field indices in [0, field_dims[f]).
    maxvals = jnp.asarray(field_dims, dtype=jnp.int32)
    u = jax.random.uniform(k_x, (B, F))
    x = jnp.minimum(jnp.floor(u * maxvals[None, :]).astype(jnp.int32),
                    maxvals[None, :] - 1)

    # Pure-JAX reference of the PyTorch forward.
    ref = table[(x + offsets[None, :]).reshape(-1)].reshape(B, F, embed_dim)

    # Path 2: VMEM-resident fast path (taken automatically for this tiny table).
    emb_fast = features_embedding_fwd(x, table, offsets)
    jax.block_until_ready(emb_fast)
    assert emb_fast.shape == (B, F, embed_dim)
    assert jnp.allclose(emb_fast, ref, atol=1e-6), "resident path mismatch"

    # Path 1: HBM DMA row-gather path (forced, exercises the large-table path).
    emb_gather = features_embedding_fwd(x, table, offsets, force_gather=True)
    jax.block_until_ready(emb_gather)
    assert emb_gather.shape == (B, F, embed_dim)
    assert jnp.allclose(emb_gather, ref, atol=1e-6), "gather path mismatch"

    print("KERNEL_OK")
</pallas_src>

<mosaic_0001>
module attributes {stable_mosaic.version = 11 : i64} {
  func.func @_resident_onehot_kernel(%arg0: i32, %arg1: memref<128x1xi32, #tpu.memory_space<vmem>>, %arg2: memref<28x16xf32, #tpu.memory_space<vmem>>, %arg3: memref<128x16xf32, #tpu.memory_space<vmem>>) attributes {dimension_semantics = [#tpu.dimension_semantics<parallel>], iteration_bounds = array<i64: 1>, scalar_prefetch = 0 : i64, scratch_operands = 0 : i64, tpu.core_type = #tpu.core_type<tc>, window_params = [{transform_indices = @transform_0, window_bounds = array<i64: 128, 1>}, {pipeline_mode = #tpu.pipeline_mode<synchronous>, transform_indices = @transform_1, window_bounds = array<i64: 28, 16>}, {transform_indices = @transform_2, window_bounds = array<i64: 128, 16>}]} {
    %c0 = arith.constant 0 : index
    %c0_0 = arith.constant 0 : index
    %0 = vector.load %arg1[%c0, %c0_0] : memref<128x1xi32, #tpu.memory_space<vmem>>, vector<128x1xi32>
    %1 = tpu.iota {dimensions = array<i32: 1>} : vector<128x28xi32>
    %2 = vector.broadcast %0 : vector<128x1xi32> to vector<128x28xi32>
    %3 = arith.cmpi eq, %2, %1 : vector<128x28xi32>
    %4 = arith.extui %3 : vector<128x28xi1> to vector<128x28xi32>
    %5 = arith.sitofp %4 : vector<128x28xi32> to vector<128x28xf32>
    %c0_1 = arith.constant 0 : index
    %c0_2 = arith.constant 0 : index
    %6 = vector.load %arg2[%c0_1, %c0_2] : memref<28x16xf32, #tpu.memory_space<vmem>>, vector<28x16xf32>
    %cst = arith.constant dense<0.000000e+00> : vector<128x16xf32>
    %7 = tpu.matmul %5, %6, %cst {dimension_numbers = #tpu.dot_dimension_numbers<[1], [0], [0], [1], [0, 0, 1, 1], [], []>} : vector<128x28xf32>, vector<28x16xf32>, vector<128x16xf32> -> vector<128x16xf32>
    %c0_3 = arith.constant 0 : index
    %c0_4 = arith.constant 0 : index
    %8 = vector.load %arg3[%c0_3, %c0_4] : memref<128x16xf32, #tpu.memory_space<vmem>>, vector<128x16xf32>
    tpu.vector_store %arg3[%c0_3, %c0_4], %7 {strides = array<i32>} : memref<128x16xf32, #tpu.memory_space<vmem>>, vector<128x16xf32>,
    return
  }
  func.func @transform_0(%arg0: i32) -> (i32, i32) {
    %c0_i32 = arith.constant 0 : i32
    %c0_i32_0 = arith.constant 0 : i32
    return %arg0, %c0_i32 : i32, i32
  }
  func.func @transform_1(%arg0: i32) -> (i32, i32) {
    %c0_i32 = arith.constant 0 : i32
    %c0_i32_0 = arith.constant 0 : i32
    %c0_i32_1 = arith.constant 0 : i32
    return %c0_i32, %c0_i32_0 : i32, i32
  }
  func.func @transform_2(%arg0: i32) -> (i32, i32) {
    %c0_i32 = arith.constant 0 : i32
    %c0_i32_0 = arith.constant 0 : i32
    return %arg0, %c0_i32 : i32, i32
  }
}

</mosaic_0001>

<bundles_post_ra>
// kernel: tpu_custom_call.1
= control target key start
LH: loop header
LB: loop body
LE: loop exit
PB: predicated region body
PF: predicated region fallthrough
CT: control target
= control target key end

     0   :  { %v452_v0 = vmov 0   ;;  %vm178_vm0 = vcmask 1043456   ;;  %vm453_vm1 = vmmov 1   ;;  %v27_v23 = vlaneseq  ;;  %s628_s0 = inlined_call_operand.vmem [shape: s32[128,1], index: 0, kind: input, shape index: {}]   ;;  %s629_s1 = inlined_call_operand.vmem [shape: f32[28,16], index: 1, kind: input, shape index: {}]   ;;  %s630_s2 = inlined_call_operand.vmem [shape: f32[128,16], index: 2, kind: output, shape index: {}]  }
   0x1   :  { %451 = vset.pattern.permute.xlu1 %v452_v0  ;;  %450 = vset.pattern.permute.xlu0 %v452_v0  ;;  %v12_v1 = vld [vmem:[%s628_s0 + $0x8] sm:$0xff]  ;;  %v11_v2 = vld [vmem:[%s628_s0] sm:$0xff]  ;;  %v21_v5 = vld [vmem:[%s628_s0 + $0x50] sm:$0xff]  ;;  %vm129_vm3 = vcmask 228352   ;;  %v454_v27 = vmov 0.0  }
   0x2   :  { %33 = vperm.xlu1 %451, %v12_v1   ;;  %30 = vperm.xlu0 %450, %v11_v2   ;;  %v20_v3 = vld [vmem:[%s628_s0 + $0x48] sm:$0xff]  ;;  %v19_v4 = vld [vmem:[%s628_s0 + $0x40] sm:$0xff]  ;;  %v13_v8 = vld [vmem:[%s628_s0 + $0x10] sm:$0xff]  ;;  %v530_v24 = vand.u32 127, %v27_v23 }
   0x3   :  { %v125_v6 = vld [vmem:[%s629_s1] sm:$0xff]  ;;  %v126_v7 = vld [vmem:[%s629_s1 + $0x8] sm:$0xff]  ;;  %v127_v10 = vld [vmem:[%s629_s1 + $0x10] sm:$0xff] }
   0x4   :  { %v433_v9 = vpack.c.bf16 %v126_v7, %v125_v6  ;;  %v128_v11 = vld [vmem:[%s629_s1 + $0x18] sm:$0xf]  ;;  %vm438_vm2 = vmpackc.low %vm178_vm0, %vm453_vm1  ;;  %v23_v15 = vld [vmem:[%s628_s0 + $0x60] sm:$0xff] }
   0x5   :  { %v437_v12 = vpack.c.bf16 %v128_v11, %v127_v10  ;;  %v22_v13 = vld [vmem:[%s628_s0 + $0x58] sm:$0xff]  ;;  %v15_v16 = vld [vmem:[%s628_s0 + $0x20] sm:$0xff]  ;;  %v24_v17 = vld [vmem:[%s628_s0 + $0x68] sm:$0xff] }
   0x6   :  { %57 = vperm.xlu1 %451, %v20_v3   ;;  %54 = vperm.xlu0 %450, %v19_v4   ;;  %v14_v14 = vld [vmem:[%s628_s0 + $0x18] sm:$0xff]  ;;  %v16_v18 = vld [vmem:[%s628_s0 + $0x28] sm:$0xff]  ;;  %v25_v19 = vld [vmem:[%s628_s0 + $0x70] sm:$0xff] }
   0x7   :  { %434 = vmatprep.subr.bf16.mxu0 %v433_v9  ;;  %443 = vmatprep.subr.bf16.mxu1 %v433_v9  ;;  %v17_v20 = vld [vmem:[%s628_s0 + $0x30] sm:$0xff]  ;;  %v26_v21 = vld [vmem:[%s628_s0 + $0x78] sm:$0xff] }
   0x8   :  { %436 = vmatpush3.bf16.msra.mxu0 %v433_v9  ;;  %445 = vmatpush3.bf16.msra.mxu1 %v433_v9  ;;  %v18_v22 = vld [vmem:[%s628_s0 + $0x38] sm:$0xff] }
   0x9   :  { %439 = vmatprep.subr.msk.bf16.mxu0 %vm438_vm2, %v437_v12  ;;  %444 = vmatprep.subr.msk.bf16.mxu1 %vm438_vm2, %v437_v12 }
   0xa   :  { %60 = vperm.xlu1 %451, %v21_v5   ;;  %36 = vperm.xlu0 %450, %v13_v8  }
   0xc   :  { %442 = vmatpush3.bf16.msk.msra.mxu0 %vm438_vm2, %v437_v12  ;;  %446 = vmatpush3.bf16.msk.msra.mxu1 %vm438_vm2, %v437_v12 }
   0xe   :  { %63 = vperm.xlu1 %451, %v22_v13   ;;  %39 = vperm.xlu0 %450, %v14_v14  }
  0x12   :  { %66 = vperm.xlu1 %451, %v23_v15   ;;  %42 = vperm.xlu0 %450, %v15_v16  }
  0x16   :  { %69 = vperm.xlu1 %451, %v24_v17   ;;  %45 = vperm.xlu0 %450, %v16_v18  }
  0x1a   :  { %72 = vperm.xlu1 %451, %v25_v19   ;;  %48 = vperm.xlu0 %450, %v17_v20  }
  0x1e   :  { %75 = vperm.xlu1 %451, %v26_v21   ;;  %51 = vperm.xlu0 %450, %v18_v22  }
  0x81   :  { %v34_v25 = vpop.permute.xlu1 %33  ;;  %v31_v26 = vpop.permute.xlu0 %30 }
  0x82   :  { %vm78_vm4 = vcmp.eq.s32.totalorder %v34_v25, %v530_v24  ;;  %vm77_vm5 = vcmp.eq.s32.totalorder %v31_v26, %v530_v24 }
  0x83   :  { %v349_v28 = vsel %vm78_vm4, 1.0, %v454_v27  ;;  %v348_v29 = vsel %vm77_vm5, 1.0, %v454_v27  ;;  %vm327_vm5 = vcmask 130048  }
  0x84   :  { %409 = vmatprep.mubr.msk.f32.mxu0 %vm129_vm3, %v348_v29 }
  0x85   :  { %v58_v30 = vpop.permute.xlu1 %57  ;;  %410 = vmatmul.mubr.msk.f32.vlgmr.msra.gmra.mrb[0].mxu0 %vm129_vm3, %v349_v28  ;;  %v55_v31 = vpop.permute.xlu0 %54 }
  0x86   :  { %vm86_vm6 = vcmp.eq.s32.totalorder %v58_v30, %v530_v24  ;;  %vm85_vm7 = vcmp.eq.s32.totalorder %v55_v31, %v530_v24 }
  0x87   :  { %v357_v32 = vsel %vm86_vm6, 1.0, %v454_v27  ;;  %v356_v33 = vsel %vm85_vm7, 1.0, %v454_v27 }
  0x88   :  { %421 = vmatprep.mubr.msk.f32.mxu1 %vm129_vm3, %v356_v33 }
  0x89   :  { %v61_v34 = vpop.permute.xlu1 %60  ;;  %422 = vmatmul.mubr.msk.f32.vlgmr.msra.gmra.mrb[0].mxu1 %vm129_vm3, %v357_v32  ;;  %v37_v35 = vpop.permute.xlu0 %36 }
  0x8a   :  { %vm87_vm8 = vcmp.eq.s32.totalorder %v61_v34, %v530_v24  ;;  %vm79_vm9 = vcmp.eq.s32.totalorder %v37_v35, %v530_v24 }
  0x8b   :  { %v358_v36 = vsel %vm87_vm8, 1.0, %v454_v27  ;;  %v350_v37 = vsel %vm79_vm9, 1.0, %v454_v27 }
  0x8c   :  { %412 = vmatprep.mubr.msk.f32.mxu0 %vm129_vm3, %v350_v37  ;;  %424 = vmatprep.mubr.msk.f32.mxu1 %vm129_vm3, %v358_v36 }
  0x8d   :  { %v64_v38 = vpop.permute.xlu1 %63  ;;  %v40_v39 = vpop.permute.xlu0 %39 }
  0x8e   :  { %vm88_vm10 = vcmp.eq.s32.totalorder %v64_v38, %v530_v24  ;;  %vm80_vm11 = vcmp.eq.s32.totalorder %v40_v39, %v530_v24 }
  0x8f   :  { %v359_v40 = vsel %vm88_vm10, 1.0, %v454_v27  ;;  %v351_v41 = vsel %vm80_vm11, 1.0, %v454_v27 }
  0x90   :  { %413 = vmatmul.mubr.msk.f32.gmra.mrb[2].mxu0 %vm129_vm3, %v351_v41  ;;  %425 = vmatmul.mubr.msk.f32.gmra.mrb[2].mxu1 %vm129_vm3, %v359_v40 }
  0x91   :  { %v67_v42 = vpop.permute.xlu1 %66  ;;  %v43_v43 = vpop.permute.xlu0 %42 }
  0x92   :  { %vm89_vm12 = vcmp.eq.s32.totalorder %v67_v42, %v530_v24  ;;  %vm81_vm13 = vcmp.eq.s32.totalorder %v43_v43, %v530_v24 }
  0x93   :  { %v360_v44 = vsel %vm89_vm12, 1.0, %v454_v27  ;;  %v352_v45 = vsel %vm81_vm13, 1.0, %v454_v27 }
  0x94   :  { %415 = vmatprep.mubr.msk.f32.mxu0 %vm129_vm3, %v352_v45  ;;  %427 = vmatprep.mubr.msk.f32.mxu1 %vm129_vm3, %v360_v44 }
  0x95   :  { %v70_v46 = vpop.permute.xlu1 %69  ;;  %v46_v47 = vpop.permute.xlu0 %45 }
  0x96   :  { %vm90_vm14 = vcmp.eq.s32.totalorder %v70_v46, %v530_v24  ;;  %vm82_vm15 = vcmp.eq.s32.totalorder %v46_v47, %v530_v24 }
  0x97   :  { %v361_v48 = vsel %vm90_vm14, 1.0, %v454_v27  ;;  %v353_v49 = vsel %vm82_vm15, 1.0, %v454_v27 }
  0x98   :  { %416 = vmatmul.mubr.msk.f32.gmra.mrb[4].mxu0 %vm129_vm3, %v353_v49  ;;  %428 = vmatmul.mubr.msk.f32.gmra.mrb[4].mxu1 %vm129_vm3, %v361_v48 }
  0x99   :  { %v73_v50 = vpop.permute.xlu1 %72  ;;  %v49_v51 = vpop.permute.xlu0 %48 }
  0x9a   :  { %vm91_vm0 = vcmp.eq.s32.totalorder %v73_v50, %v530_v24  ;;  %vm83_vm1 = vcmp.eq.s32.totalorder %v49_v51, %v530_v24 }
  0x9b   :  { %v362_v52 = vsel %vm91_vm0, 1.0, %v454_v27  ;;  %v354_v53 = vsel %vm83_vm1, 1.0, %v454_v27 }
  0x9c   :  { %418 = vmatprep.mubr.msk.f32.mxu0 %vm129_vm3, %v354_v53  ;;  %430 = vmatprep.mubr.msk.f32.mxu1 %vm129_vm3, %v362_v52 }
  0x9d   :  { %v76_v54 = vpop.permute.xlu1 %75  ;;  %v52_v55 = vpop.permute.xlu0 %51 }
  0x9e   :  { %vm92_vm2 = vcmp.eq.s32.totalorder %v76_v54, %v530_v24  ;;  %vm84_vm4 = vcmp.eq.s32.totalorder %v52_v55, %v530_v24 }
  0x9f   :  { %v363_v56 = vsel %vm92_vm2, 1.0, %v454_v27  ;;  %v355_v57 = vsel %vm84_vm4, 1.0, %v454_v27 }
  0xa0   :  { %419 = vmatmul.mubr.msk.f32.gmra.mrb[6].mxu0 %vm129_vm3, %v355_v57  ;;  %431 = vmatmul.mubr.msk.f32.gmra.mrb[6].mxu1 %vm129_vm3, %v363_v56 }
 0x158   :  { %v411_v58 = vpop.f32.mrb[0].mxu0 }
 0x159   :  { %329 = vst.msk [vmem:[%s630_s2 + $0x8] sm:$0xff] %vm327_vm5, %v411_v58  ;;  %v248_v59 = vpop.f32.mrb[1].mxu0 }
 0x15a   :  { %328 = vst.msk [vmem:[%s630_s2] sm:$0xff] %vm327_vm5, %v248_v59 }
 0x15c   :  { %v423_v60 = vpop.f32.mrb[0].mxu1 }
 0x15d   :  { %337 = vst.msk [vmem:[%s630_s2 + $0x48] sm:$0xff] %vm327_vm5, %v423_v60  ;;  %v288_v61 = vpop.f32.mrb[1].mxu1 }
 0x15e   :  { %336 = vst.msk [vmem:[%s630_s2 + $0x40] sm:$0xff] %vm327_vm5, %v288_v61 }
 0x163   :  { %v414_v62 = vpop.f32.mrb[2].mxu0  ;;  %v426_v63 = vpop.f32.mrb[2].mxu1 }
 0x164   :  { %331 = vst.msk [vmem:[%s630_s2 + $0x18] sm:$0xff] %vm327_vm5, %v414_v62  ;;  %339 = vst.msk [vmem:[%s630_s2 + $0x58] sm:$0xff] %vm327_vm5, %v426_v63  ;;  %v258_v0 = vpop.f32.mrb[3].mxu0  ;;  %v298_v1 = vpop.f32.mrb[3].mxu1 }
 0x165   :  { %330 = vst.msk [vmem:[%s630_s2 + $0x10] sm:$0xff] %vm327_vm5, %v258_v0  ;;  %338 = vst.msk [vmem:[%s630_s2 + $0x50] sm:$0xff] %vm327_vm5, %v298_v1 }
 0x16b   :  { %v417_v2 = vpop.f32.mrb[4].mxu0  ;;  %v429_v3 = vpop.f32.mrb[4].mxu1 }
 0x16c   :  { %333 = vst.msk [vmem:[%s630_s2 + $0x28] sm:$0xff] %vm327_vm5, %v417_v2  ;;  %341 = vst.msk [vmem:[%s630_s2 + $0x68] sm:$0xff] %vm327_vm5, %v429_v3  ;;  %v268_v4 = vpop.f32.mrb[5].mxu0  ;;  %v308_v5 = vpop.f32.mrb[5].mxu1 }
 0x16d   :  { %332 = vst.msk [vmem:[%s630_s2 + $0x20] sm:$0xff] %vm327_vm5, %v268_v4  ;;  %340 = vst.msk [vmem:[%s630_s2 + $0x60] sm:$0xff] %vm327_vm5, %v308_v5 }
 0x173   :  { %v420_v6 = vpop.f32.mrb[6].mxu0  ;;  %v432_v7 = vpop.f32.mrb[6].mxu1 }
 0x174   :  { %335 = vst.msk [vmem:[%s630_s2 + $0x38] sm:$0xff] %vm327_vm5, %v420_v6  ;;  %343 = vst.msk [vmem:[%s630_s2 + $0x78] sm:$0xff] %vm327_vm5, %v432_v7  ;;  %v278_v8 = vpop.f32.mrb[7].mxu0  ;;  %v318_v9 = vpop.f32.mrb[7].mxu1 }
 0x175   :  { %334 = vst.msk [vmem:[%s630_s2 + $0x30] sm:$0xff] %vm327_vm5, %v278_v8  ;;  %342 = vst.msk [vmem:[%s630_s2 + $0x70] sm:$0xff] %vm327_vm5, %v318_v9 }

</bundles_post_ra>
